<compile_context>
chip_gen: v7x
topology: tpu7x:2x2x1
jax: 0.10.0
libtpu: 0.0.40
codegen_flags: <defaults>
</compile_context>

<pallas_src>
import functools

import jax
import jax.numpy as jnp
from jax import lax
from jax.experimental import pallas as pl
from jax.experimental.pallas import tpu as pltpu

LANE = 128
ACC_ROWS_MAX = 64                       # 8 independent (8,128) chains per plane
TARGET_BLOCK_BYTES = 4 * 1024 * 1024    # ~4 MiB per input block, any dtype
VMEM_LIMIT_BYTES = 32 * 1024 * 1024     # safe on v5e/v6e/v7x


def _default_nsplit():
    """Two reduction splits only when one device drives >1 TensorCore."""
    try:
        kind = jax.devices()[0].device_kind.lower()
    except Exception:
        return 1
    if "v7" in kind:
        return 2
    # v4 / v5p megacore chips (but not the single-core "lite" variants).
    if ("v4" in kind or "v5p" in kind) and "lite" not in kind:
        return 2
    return 1


def _asym_mse_kernel(p_ref, t_ref, out_ref, *, total_rows, n_blocks,
                     blocks_per_split, acc_rows):
    """Partial reduction over one (block_rows, LANE) tile.

    out_ref : (3, acc_rows, LANE) f32, resident across the block axis.
        plane 0: sum(diff^2)              over valid elements
        plane 1: sum(diff^2 | diff >= 0)
        plane 2: count(diff >= 0)
    """
    s = pl.program_id(0)
    b = pl.program_id(1)
    gb = s * blocks_per_split + b        # logical (unclamped) global block idx

    @pl.when(b == 0)
    def _init():
        out_ref[...] = jnp.zeros_like(out_ref)

    rows, lanes = p_ref.shape
    chunks = rows // acc_rows

    diff = p_ref[...].astype(jnp.float32) - t_ref[...].astype(jnp.float32)
    sq = diff * diff
    pos = diff >= 0.0

    def fold(x):
        # (rows, LANE) -> (acc_rows, LANE): pure cross-vreg VPU adds, with
        # acc_rows/8 independent accumulation chains per plane (no XLU).
        return x.reshape(chunks, acc_rows, lanes).sum(axis=0)

    def accumulate(sq_all, sq_pos, cnt_pos):
        out_ref[0] += fold(sq_all)
        out_ref[1] += fold(sq_pos)
        out_ref[2] += fold(cnt_pos)

    # Only the last real block (and clamped phantom blocks) can hold padding;
    # every earlier block takes the unmasked fast path.
    @pl.when(gb < n_blocks - 1)
    def _interior():
        accumulate(sq, jnp.where(pos, sq, 0.0), pos.astype(jnp.float32))

    @pl.when(gb >= n_blocks - 1)
    def _tail():
        # Row-based masking: index math stays tiny (no elementwise int32
        # products), and padded rows from a partial trailing block are zeroed
        # via select (safe even if the padding holds NaN/Inf bit patterns).
        row_ids = lax.broadcasted_iota(jnp.int32, (rows, lanes), 0)
        remaining = total_rows - gb * rows          # <= 0 for phantom blocks
        valid = row_ids < remaining
        posv = jnp.logical_and(pos, valid)
        accumulate(jnp.where(valid, sq, 0.0),
                   jnp.where(posv, sq, 0.0),
                   posv.astype(jnp.float32))


def asymmetric_mse_loss(predict, target, scale=2.0):
    assert predict.shape == target.shape
    p = predict.reshape(-1)       # free bitcast; keep native dtype
    t = target.reshape(-1)
    n = p.shape[0]

    # Peel off the <128-element ragged lane tail in the wrapper (tiny jnp ops)
    # instead of padding / re-materializing both full inputs.
    n_main = (n // LANE) * LANE
    tail_sum_all = jnp.float32(0.0)
    tail_sum_pos = jnp.float32(0.0)
    tail_cnt_pos = jnp.float32(0.0)
    if n_main != n:
        tp = p[n_main:].astype(jnp.float32)
        tt = t[n_main:].astype(jnp.float32)
        d = tp - tt
        sq = d * d
        posm = d >= 0.0
        tail_sum_all = jnp.sum(sq)
        tail_sum_pos = jnp.sum(jnp.where(posm, sq, 0.0))
        tail_cnt_pos = jnp.sum(posm.astype(jnp.float32))
        p = p[:n_main]
        t = t[:n_main]

    if n_main == 0:
        sum_all, sum_pos, cnt_pos = tail_sum_all, tail_sum_pos, tail_cnt_pos
    else:
        rows = n_main // LANE
        p2 = p.reshape(rows, LANE)
        t2 = t.reshape(rows, LANE)

        itemsize = jnp.dtype(predict.dtype).itemsize
        target_rows = (TARGET_BLOCK_BYTES // (LANE * itemsize))
        target_rows = max(ACC_ROWS_MAX,
                          (target_rows // ACC_ROWS_MAX) * ACC_ROWS_MAX)
        if rows >= ACC_ROWS_MAX:
            block_rows = min(target_rows, (rows // ACC_ROWS_MAX) * ACC_ROWS_MAX)
            acc_rows = ACC_ROWS_MAX
        else:
            block_rows = rows            # single block == full array dims
            acc_rows = rows

        n_blocks = pl.cdiv(rows, block_rows)
        nsplit = max(1, min(_default_nsplit(), n_blocks))
        blocks_per_split = pl.cdiv(n_blocks, nsplit)
        max_block = n_blocks - 1

        def in_map(s, b):
            # Clamp phantom blocks (past the real extent) onto the last real
            # block; the kernel masks them via the unclamped logical index.
            return (jnp.minimum(s * blocks_per_split + b, max_block), 0)

        kernel = functools.partial(
            _asym_mse_kernel,
            total_rows=rows,
            n_blocks=n_blocks,
            blocks_per_split=blocks_per_split,
            acc_rows=acc_rows,
        )

        cost = pl.CostEstimate(
            flops=8 * n_main,
            transcendentals=0,
            bytes_accessed=2 * n_main * itemsize + nsplit * 3 * acc_rows * LANE * 4,
        )

        partials = pl.pallas_call(
            kernel,
            out_shape=jax.ShapeDtypeStruct((nsplit * 3, acc_rows, LANE),
                                           jnp.float32),
            grid_spec=pltpu.PrefetchScalarGridSpec(
                num_scalar_prefetch=0,
                grid=(nsplit, blocks_per_split),
                in_specs=[
                    pl.BlockSpec((block_rows, LANE), in_map),
                    pl.BlockSpec((block_rows, LANE), in_map),
                ],
                out_specs=pl.BlockSpec((3, acc_rows, LANE),
                                       lambda s, b: (s, 0, 0)),
            ),
            compiler_params=pltpu.CompilerParams(
                # TODO(synk): on v7x verify "parallel" shards the split axis
                # across both TensorCores; otherwise switch to CORE_PARALLEL.
                dimension_semantics=("parallel", "arbitrary"),
                vmem_limit_bytes=VMEM_LIMIT_BYTES,
            ),
            cost_estimate=cost,
        )(p2, t2)

        # Tiny (3,) cross-lane/split reduce in XLA.
        totals = partials.reshape(nsplit, 3, acc_rows * LANE).sum(axis=(0, 2))
        sum_all = totals[0] + tail_sum_all
        sum_pos = totals[1] + tail_sum_pos
        cnt_pos = totals[2] + tail_cnt_pos

    sum_neg = sum_all - sum_pos
    cnt_neg = jnp.float32(n) - cnt_pos
    mean_pos = jnp.where(cnt_pos > 0.0, sum_pos / jnp.maximum(cnt_pos, 1.0), 0.0)
    mean_neg = jnp.where(cnt_neg > 0.0, sum_neg / jnp.maximum(cnt_neg, 1.0), 0.0)
    return scale * mean_pos + mean_neg


def _reference_loss(predict, target, scale=2.0):
    p = predict.reshape(-1).astype(jnp.float32)
    t = target.reshape(-1).astype(jnp.float32)
    diff = p - t
    sq = diff * diff
    pos = diff >= 0.0
    neg = diff < 0.0
    cnt_pos = jnp.sum(pos)
    cnt_neg = jnp.sum(neg)
    mean_pos = jnp.where(
        cnt_pos > 0, jnp.sum(jnp.where(pos, sq, 0.0)) / jnp.maximum(cnt_pos, 1), 0.0)
    mean_neg = jnp.where(
        cnt_neg > 0, jnp.sum(jnp.where(neg, sq, 0.0)) / jnp.maximum(cnt_neg, 1), 0.0)
    return scale * mean_pos + mean_neg


if __name__ == "__main__":
    key = jax.random.PRNGKey(0)
    k1, k2, k3, k4, k5, k6 = jax.random.split(key, 6)

    # Case 1: flattened size is a multiple of 128 (no wrapper tail, one block).
    predict = jax.random.normal(k1, (2, 4, 16, 16), dtype=jnp.float32)
    target = jax.random.normal(k2, (2, 4, 16, 16), dtype=jnp.float32)
    loss = jax.block_until_ready(asymmetric_mse_loss(predict, target, scale=2.0))
    ref = _reference_loss(predict, target, scale=2.0)
    assert jnp.allclose(loss, ref, rtol=1e-5, atol=1e-6), (loss, ref)

    # Case 2: ragged flat size (wrapper tail + in-kernel last-block masking).
    p2 = jax.random.normal(k3, (3, 5, 33, 17), dtype=jnp.float32)
    t2 = jax.random.normal(k4, (3, 5, 33, 17), dtype=jnp.float32)
    loss2 = jax.block_until_ready(asymmetric_mse_loss(p2, t2, scale=2.0))
    ref2 = _reference_loss(p2, t2, scale=2.0)
    assert jnp.allclose(loss2, ref2, rtol=1e-5, atol=1e-6), (loss2, ref2)

    # Case 3: bf16 inputs, multi-block path with a ragged tail (itemsize-scaled
    # block sizing + in-kernel cast).
    p3 = jax.random.normal(k5, (4, 3, 40, 50), dtype=jnp.bfloat16)
    t3 = jax.random.normal(k6, (4, 3, 40, 50), dtype=jnp.bfloat16)
    loss3 = jax.block_until_ready(asymmetric_mse_loss(p3, t3, scale=2.0))
    ref3 = _reference_loss(p3, t3, scale=2.0)
    assert jnp.allclose(loss3, ref3, rtol=1e-4, atol=1e-5), (loss3, ref3)

    print("KERNEL_OK")
</pallas_src>

<mosaic_0001>
module attributes {stable_mosaic.version = 11 : i64} {
  func.func @_asym_mse_kernel(%arg0: i32, %arg1: i32, %arg2: memref<16x128xf32, #tpu.memory_space<vmem>>, %arg3: memref<16x128xf32, #tpu.memory_space<vmem>>, %arg4: memref<3x16x128xf32, #tpu.memory_space<vmem>>) attributes {dimension_semantics = [#tpu.dimension_semantics<parallel>, #tpu.dimension_semantics<arbitrary>], iteration_bounds = array<i64: 1, 1>, scalar_prefetch = 0 : i64, scratch_operands = 0 : i64, tpu.core_type = #tpu.core_type<tc>, window_params = [{transform_indices = @transform_0, window_bounds = array<i64: 16, 128>}, {transform_indices = @transform_1, window_bounds = array<i64: 16, 128>}, {transform_indices = @transform_2, window_bounds = array<i64: 3, 16, 128>}]} {
    %c1_i32 = arith.constant 1 : i32
    %0 = arith.muli %arg0, %c1_i32 : i32
    %1 = arith.addi %0, %arg1 : i32
    %c0_i32 = arith.constant 0 : i32
    %2 = arith.cmpi eq, %arg1, %c0_i32 : i32
    %3 = arith.extui %2 : i1 to i32
    %c0_i32_0 = arith.constant 0 : i32
    %4 = arith.cmpi ne, %3, %c0_i32_0 : i32
    scf.if %4 {
      %cst_8 = arith.constant 0.000000e+00 : f32
      %17 = vector.broadcast %cst_8 : f32 to vector<3x16x128xf32>
      %c0_9 = arith.constant 0 : index
      %c0_10 = arith.constant 0 : index
      %c0_11 = arith.constant 0 : index
      %18 = vector.load %arg4[%c0_9, %c0_10, %c0_11] : memref<3x16x128xf32, #tpu.memory_space<vmem>>, vector<3x16x128xf32>
      tpu.vector_store %arg4[%c0_9, %c0_10, %c0_11], %17 {strides = array<i32>} : memref<3x16x128xf32, #tpu.memory_space<vmem>>, vector<3x16x128xf32>,
    } else {
    }
    %c0 = arith.constant 0 : index
    %c0_1 = arith.constant 0 : index
    %5 = vector.load %arg2[%c0, %c0_1] : memref<16x128xf32, #tpu.memory_space<vmem>>, vector<16x128xf32>
    %c0_2 = arith.constant 0 : index
    %c0_3 = arith.constant 0 : index
    %6 = vector.load %arg3[%c0_2, %c0_3] : memref<16x128xf32, #tpu.memory_space<vmem>>, vector<16x128xf32>
    %7 = arith.subf %5, %6 : vector<16x128xf32>
    %8 = arith.mulf %7, %7 : vector<16x128xf32>
    %cst = arith.constant 0.000000e+00 : f32
    %9 = vector.broadcast %cst : f32 to vector<16x128xf32>
    %10 = arith.cmpf oge, %7, %9 : vector<16x128xf32>
    %c0_i32_4 = arith.constant 0 : i32
    %11 = arith.cmpi slt, %1, %c0_i32_4 : i32
    %12 = arith.extui %11 : i1 to i32
    %c0_i32_5 = arith.constant 0 : i32
    %13 = arith.cmpi ne, %12, %c0_i32_5 : i32
    scf.if %13 {
      %cst_8 = arith.constant 0.000000e+00 : f32
      %17 = vector.broadcast %cst_8 : f32 to vector<16x128xf32>
      %18 = arith.select %10, %8, %17 : vector<16x128xi1>, vector<16x128xf32>
      %19 = arith.extui %10 : vector<16x128xi1> to vector<16x128xi32>
      %20 = arith.sitofp %19 : vector<16x128xi32> to vector<16x128xf32>
      %c0_9 = arith.constant 0 : index
      %c0_10 = arith.constant 0 : index
      %c0_11 = arith.constant 0 : index
      %21 = vector.load %arg4[%c0_9, %c0_10, %c0_11] : memref<3x16x128xf32, #tpu.memory_space<vmem>>, vector<1x16x128xf32>
      %22 = vector.shape_cast %21 : vector<1x16x128xf32> to vector<16x128xf32>
      %23 = vector.shape_cast %8 : vector<16x128xf32> to vector<1x16x128xf32>
      %cst_12 = arith.constant dense<0.000000e+00> : vector<16x128xf32>
      %24 = vector.multi_reduction <add>, %23, %cst_12 [0] : vector<1x16x128xf32> to vector<16x128xf32>
      %25 = arith.addf %22, %24 : vector<16x128xf32>
      %c0_13 = arith.constant 0 : index
      %c0_14 = arith.constant 0 : index
      %c0_15 = arith.constant 0 : index
      %26 = vector.load %arg4[%c0_13, %c0_14, %c0_15] : memref<3x16x128xf32, #tpu.memory_space<vmem>>, vector<1x16x128xf32>
      %27 = vector.shape_cast %26 : vector<1x16x128xf32> to vector<16x128xf32>
      %28 = vector.shape_cast %25 : vector<16x128xf32> to vector<1x16x128xf32>
      tpu.vector_store %arg4[%c0_13, %c0_14, %c0_15], %28 {strides = array<i32>} : memref<3x16x128xf32, #tpu.memory_space<vmem>>, vector<1x16x128xf32>,
      %c1 = arith.constant 1 : index
      %c0_16 = arith.constant 0 : index
      %c0_17 = arith.constant 0 : index
      %29 = vector.load %arg4[%c1, %c0_16, %c0_17] : memref<3x16x128xf32, #tpu.memory_space<vmem>>, vector<1x16x128xf32>
      %30 = vector.shape_cast %29 : vector<1x16x128xf32> to vector<16x128xf32>
      %31 = vector.shape_cast %18 : vector<16x128xf32> to vector<1x16x128xf32>
      %cst_18 = arith.constant dense<0.000000e+00> : vector<16x128xf32>
      %32 = vector.multi_reduction <add>, %31, %cst_18 [0] : vector<1x16x128xf32> to vector<16x128xf32>
      %33 = arith.addf %30, %32 : vector<16x128xf32>
      %c1_19 = arith.constant 1 : index
      %c0_20 = arith.constant 0 : index
      %c0_21 = arith.constant 0 : index
      %34 = vector.load %arg4[%c1_19, %c0_20, %c0_21] : memref<3x16x128xf32, #tpu.memory_space<vmem>>, vector<1x16x128xf32>
      %35 = vector.shape_cast %34 : vector<1x16x128xf32> to vector<16x128xf32>
      %36 = vector.shape_cast %33 : vector<16x128xf32> to vector<1x16x128xf32>
      tpu.vector_store %arg4[%c1_19, %c0_20, %c0_21], %36 {strides = array<i32>} : memref<3x16x128xf32, #tpu.memory_space<vmem>>, vector<1x16x128xf32>,
      %c2 = arith.constant 2 : index
      %c0_22 = arith.constant 0 : index
      %c0_23 = arith.constant 0 : index
      %37 = vector.load %arg4[%c2, %c0_22, %c0_23] : memref<3x16x128xf32, #tpu.memory_space<vmem>>, vector<1x16x128xf32>
      %38 = vector.shape_cast %37 : vector<1x16x128xf32> to vector<16x128xf32>
      %39 = vector.shape_cast %20 : vector<16x128xf32> to vector<1x16x128xf32>
      %cst_24 = arith.constant dense<0.000000e+00> : vector<16x128xf32>
      %40 = vector.multi_reduction <add>, %39, %cst_24 [0] : vector<1x16x128xf32> to vector<16x128xf32>
      %41 = arith.addf %38, %40 : vector<16x128xf32>
      %c2_25 = arith.constant 2 : index
      %c0_26 = arith.constant 0 : index
      %c0_27 = arith.constant 0 : index
      %42 = vector.load %arg4[%c2_25, %c0_26, %c0_27] : memref<3x16x128xf32, #tpu.memory_space<vmem>>, vector<1x16x128xf32>
      %43 = vector.shape_cast %42 : vector<1x16x128xf32> to vector<16x128xf32>
      %44 = vector.shape_cast %41 : vector<16x128xf32> to vector<1x16x128xf32>
      tpu.vector_store %arg4[%c2_25, %c0_26, %c0_27], %44 {strides = array<i32>} : memref<3x16x128xf32, #tpu.memory_space<vmem>>, vector<1x16x128xf32>,
    } else {
    }
    %c0_i32_6 = arith.constant 0 : i32
    %14 = arith.cmpi sge, %1, %c0_i32_6 : i32
    %15 = arith.extui %14 : i1 to i32
    %c0_i32_7 = arith.constant 0 : i32
    %16 = arith.cmpi ne, %15, %c0_i32_7 : i32
    scf.if %16 {
      %17 = tpu.iota {dimensions = array<i32: 0>} : vector<16x128xi32>
      %c16_i32 = arith.constant 16 : i32
      %18 = arith.muli %1, %c16_i32 : i32
      %c16_i32_8 = arith.constant 16 : i32
      %19 = arith.subi %c16_i32_8, %18 : i32
      %20 = vector.broadcast %19 : i32 to vector<16x128xi32>
      %21 = arith.cmpi slt, %17, %20 : vector<16x128xi32>
      %22 = arith.andi %10, %21 : vector<16x128xi1>
      %cst_9 = arith.constant 0.000000e+00 : f32
      %23 = vector.broadcast %cst_9 : f32 to vector<16x128xf32>
      %24 = arith.select %21, %8, %23 : vector<16x128xi1>, vector<16x128xf32>
      %cst_10 = arith.constant 0.000000e+00 : f32
      %25 = vector.broadcast %cst_10 : f32 to vector<16x128xf32>
      %26 = arith.select %22, %8, %25 : vector<16x128xi1>, vector<16x128xf32>
      %27 = arith.extui %22 : vector<16x128xi1> to vector<16x128xi32>
      %28 = arith.sitofp %27 : vector<16x128xi32> to vector<16x128xf32>
      %c0_11 = arith.constant 0 : index
      %c0_12 = arith.constant 0 : index
      %c0_13 = arith.constant 0 : index
      %29 = vector.load %arg4[%c0_11, %c0_12, %c0_13] : memref<3x16x128xf32, #tpu.memory_space<vmem>>, vector<1x16x128xf32>
      %30 = vector.shape_cast %29 : vector<1x16x128xf32> to vector<16x128xf32>
      %31 = vector.shape_cast %24 : vector<16x128xf32> to vector<1x16x128xf32>
      %cst_14 = arith.constant dense<0.000000e+00> : vector<16x128xf32>
      %32 = vector.multi_reduction <add>, %31, %cst_14 [0] : vector<1x16x128xf32> to vector<16x128xf32>
      %33 = arith.addf %30, %32 : vector<16x128xf32>
      %c0_15 = arith.constant 0 : index
      %c0_16 = arith.constant 0 : index
      %c0_17 = arith.constant 0 : index
      %34 = vector.load %arg4[%c0_15, %c0_16, %c0_17] : memref<3x16x128xf32, #tpu.memory_space<vmem>>, vector<1x16x128xf32>
      %35 = vector.shape_cast %34 : vector<1x16x128xf32> to vector<16x128xf32>
      %36 = vector.shape_cast %33 : vector<16x128xf32> to vector<1x16x128xf32>
      tpu.vector_store %arg4[%c0_15, %c0_16, %c0_17], %36 {strides = array<i32>} : memref<3x16x128xf32, #tpu.memory_space<vmem>>, vector<1x16x128xf32>,
      %c1 = arith.constant 1 : index
      %c0_18 = arith.constant 0 : index
      %c0_19 = arith.constant 0 : index
      %37 = vector.load %arg4[%c1, %c0_18, %c0_19] : memref<3x16x128xf32, #tpu.memory_space<vmem>>, vector<1x16x128xf32>
      %38 = vector.shape_cast %37 : vector<1x16x128xf32> to vector<16x128xf32>
      %39 = vector.shape_cast %26 : vector<16x128xf32> to vector<1x16x128xf32>
      %cst_20 = arith.constant dense<0.000000e+00> : vector<16x128xf32>
      %40 = vector.multi_reduction <add>, %39, %cst_20 [0] : vector<1x16x128xf32> to vector<16x128xf32>
      %41 = arith.addf %38, %40 : vector<16x128xf32>
      %c1_21 = arith.constant 1 : index
      %c0_22 = arith.constant 0 : index
      %c0_23 = arith.constant 0 : index
      %42 = vector.load %arg4[%c1_21, %c0_22, %c0_23] : memref<3x16x128xf32, #tpu.memory_space<vmem>>, vector<1x16x128xf32>
      %43 = vector.shape_cast %42 : vector<1x16x128xf32> to vector<16x128xf32>
      %44 = vector.shape_cast %41 : vector<16x128xf32> to vector<1x16x128xf32>
      tpu.vector_store %arg4[%c1_21, %c0_22, %c0_23], %44 {strides = array<i32>} : memref<3x16x128xf32, #tpu.memory_space<vmem>>, vector<1x16x128xf32>,
      %c2 = arith.constant 2 : index
      %c0_24 = arith.constant 0 : index
      %c0_25 = arith.constant 0 : index
      %45 = vector.load %arg4[%c2, %c0_24, %c0_25] : memref<3x16x128xf32, #tpu.memory_space<vmem>>, vector<1x16x128xf32>
      %46 = vector.shape_cast %45 : vector<1x16x128xf32> to vector<16x128xf32>
      %47 = vector.shape_cast %28 : vector<16x128xf32> to vector<1x16x128xf32>
      %cst_26 = arith.constant dense<0.000000e+00> : vector<16x128xf32>
      %48 = vector.multi_reduction <add>, %47, %cst_26 [0] : vector<1x16x128xf32> to vector<16x128xf32>
      %49 = arith.addf %46, %48 : vector<16x128xf32>
      %c2_27 = arith.constant 2 : index
      %c0_28 = arith.constant 0 : index
      %c0_29 = arith.constant 0 : index
      %50 = vector.load %arg4[%c2_27, %c0_28, %c0_29] : memref<3x16x128xf32, #tpu.memory_space<vmem>>, vector<1x16x128xf32>
      %51 = vector.shape_cast %50 : vector<1x16x128xf32> to vector<16x128xf32>
      %52 = vector.shape_cast %49 : vector<16x128xf32> to vector<1x16x128xf32>
      tpu.vector_store %arg4[%c2_27, %c0_28, %c0_29], %52 {strides = array<i32>} : memref<3x16x128xf32, #tpu.memory_space<vmem>>, vector<1x16x128xf32>,
    } else {
    }
    return
  }
  func.func @transform_0(%arg0: i32, %arg1: i32) -> (i32, i32) {
    %c1_i32 = arith.constant 1 : i32
    %0 = arith.muli %arg0, %c1_i32 : i32
    %1 = arith.addi %0, %arg1 : i32
    %c0_i32 = arith.constant 0 : i32
    %2 = arith.minsi %1, %c0_i32 : i32
    %c0_i32_0 = arith.constant 0 : i32
    %c0_i32_1 = arith.constant 0 : i32
    return %2, %c0_i32_0 : i32, i32
  }
  func.func @transform_1(%arg0: i32, %arg1: i32) -> (i32, i32) {
    %c1_i32 = arith.constant 1 : i32
    %0 = arith.muli %arg0, %c1_i32 : i32
    %1 = arith.addi %0, %arg1 : i32
    %c0_i32 = arith.constant 0 : i32
    %2 = arith.minsi %1, %c0_i32 : i32
    %c0_i32_0 = arith.constant 0 : i32
    %c0_i32_1 = arith.constant 0 : i32
    return %2, %c0_i32_0 : i32, i32
  }
  func.func @transform_2(%arg0: i32, %arg1: i32) -> (i32, i32, i32) {
    %c0_i32 = arith.constant 0 : i32
    %c0_i32_0 = arith.constant 0 : i32
    %c0_i32_1 = arith.constant 0 : i32
    return %arg0, %c0_i32, %c0_i32_0 : i32, i32, i32
  }
}

</mosaic_0001>

<bundles_post_ra>
// kernel: tpu_custom_call.1
= control target key start
LH: loop header
LB: loop body
LE: loop exit
PB: predicated region body
PF: predicated region fallthrough
CT: control target
= control target key end

     0   :  { %7 = vsyncpa [#allocation3], 0  ;;  %s335_s0 = inlined_call_operand.hbm [shape: f32[16,128], index: 0, kind: input, shape index: {}]   ;;  %s336_s1 = inlined_call_operand.hbm [shape: f32[16,128], index: 1, kind: input, shape index: {}]   ;;  %s337_s2 = inlined_call_operand.hbm [shape: f32[3,16,128], index: 2, kind: output, shape index: {}]  }
   0x1   :  { %8 = vsyncpa [#allocation6], 0 }
   0x2   :  { %9 = vsyncpa [#allocation4], 0  ;;  %s269_s9 = smov [#allocation2]   ;;  %s197_s13 = scalar_lea.hbm %s335_s0, 256 }
   0x3   :  { %s21_s10 = sshll.u32 %s269_s9, 4  ;;  %p198_p0 = scmp.ne.s32.totalorder %s335_s0, %s197_s13  ;;  %s22_s10 = int_to_ptr.vmem [resolvable:$true] %s21_s10 }
   0x4   :  { %p201_p1 = scmp.lt.u32.totalorder %s197_s13, %s335_s0 }
   0x6   :  { %p203_p2 = pnand %p201_p1, %p198_p0 }
   0x8   :  { %206 = shalt.err (!%p203_p2)
}
   0x9   :  { %s207_s18 = scalar_lea.vmem %s22_s10, 256  ;;  %p212_p4 = scmp.lt.s32.totalorder %s22_s10, %s22_s10 }
   0xa   :  { %p208_p3 = scmp.ne.s32.totalorder %s22_s10, %s207_s18  ;;  %p213_p5 = scmp.lt.s32.totalorder %s207_s18, %s207_s18 }
   0xc   :  { %p214_p6 = por %p213_p5, %p212_p4 }
   0xe   :  { %p215_p7 = pnand %p214_p6, %p208_p3 }
  0x10   :  { %218 = shalt.err (!%p215_p7)
}
  0x11   :  { %s270_s19 = smov 128   ;;  %s271_s20 = smov 8  }
  0x12   :  { %27 = dma.hbm_to_vmem [thread:$0]  %s335_s0, 256, %s22_s10, [#allocation3], %s270_s19, %s270_s19, %s271_s20  }
  0x13   :  { %s272_s23 = smov [#allocation5]   ;;  %s219_s27 = scalar_lea.hbm %s336_s1, 256 }
  0x14   :  { %s39_s24 = sshll.u32 %s272_s23, 4  ;;  %p220_p8 = scmp.ne.s32.totalorder %s336_s1, %s219_s27  ;;  %s40_s24 = int_to_ptr.vmem [resolvable:$true] %s39_s24 }
  0x15   :  { %p223_p9 = scmp.lt.u32.totalorder %s219_s27, %s336_s1 }
  0x17   :  { %p225_p10 = pnand %p223_p9, %p220_p8 }
  0x19   :  { %228 = shalt.err (!%p225_p10)
}
  0x1a   :  { %s229_s4 = scalar_lea.vmem %s40_s24, 256  ;;  %p234_p12 = scmp.lt.s32.totalorder %s40_s24, %s40_s24 }
  0x1b   :  { %p230_p11 = scmp.ne.s32.totalorder %s40_s24, %s229_s4  ;;  %p235_p13 = scmp.lt.s32.totalorder %s229_s4, %s229_s4 }
  0x1d   :  { %p236_p0 = por %p235_p13, %p234_p12 }
  0x1f   :  { %p237_p1 = pnand %p236_p0, %p230_p11 }
  0x21   :  { %240 = shalt.err (!%p237_p1)
}
  0x22   :  { %45 = dma.hbm_to_vmem [thread:$0]  %s336_s1, 256, %s40_s24, [#allocation6], %s270_s19, %s270_s19, %s271_s20  }
  0x23   :  { %263 = dma.done.wait [#allocation3], 256  }
  0x24   :  { %264 = vsyncadd [#allocation3], 4294967040 }
  0x25   :  { %265 = dma.done.wait [#allocation6], 256  }
  0x26   :  { %266 = vsyncadd [#allocation6], 4294967040  ;;  %v71_v0 = vld [vmem:[#allocation2] sm:$0xff]  ;;  %v73_v1 = vld [vmem:[#allocation5] sm:$0xff]  ;;  %v273_v8 = vmov 0.0   ;;  %s274_s6 = smov [#allocation7]  }
  0x27   :  { %v72_v2 = vld [vmem:[#allocation2 + $0x8] sm:$0xff]  ;;  %v75_v3 = vsub.f32 %v71_v0, %v73_v1  ;;  %v74_v4 = vld [vmem:[#allocation5 + $0x8] sm:$0xff]  ;;  %s170_s7 = sshll.u32 %s274_s6, 4  ;;  %s171_s7 = int_to_ptr.vmem [resolvable:$true] %s170_s7 }
  0x28   :  { %v76_v5 = vsub.f32 %v72_v2, %v74_v4  ;;  %s241_s1 = scalar_lea.vmem %s171_s7, 768  ;;  %p246_p3 = scmp.lt.s32.totalorder %s171_s7, %s171_s7 }
  0x29   :  { %v77_v6 = vmul.f32 %v75_v3, %v75_v3  ;;  %vm79_vm0 = vcmp.ge.f32.partialorder %v75_v3, 0.0  ;;  %p242_p2 = scmp.ne.s32.totalorder %s171_s7, %s241_s1  ;;  %p247_p4 = scmp.lt.s32.totalorder %s241_s1, %s241_s1 }
  0x2a   :  { %v78_v7 = vmul.f32 %v76_v5, %v76_v5  ;;  %vm80_vm1 = vcmp.ge.f32.partialorder %v76_v5, 0.0  ;;  %v189_v9 = vsel %vm79_vm0, 1.0, %v273_v8 }
  0x2b   :  { %v133_v10 = vsel %vm79_vm0, %v77_v6, 0.0  ;;  %v190_v11 = vsel %vm80_vm1, 1.0, %v273_v8  ;;  %145 = vst [vmem:[#allocation7] sm:$0xff] %v77_v6  ;;  %163 = vst [vmem:[#allocation7 + $0x20] sm:$0xff] %v189_v9  ;;  %p248_p5 = por %p247_p4, %p246_p3 }
  0x2c   :  { %v134_v12 = vsel %vm80_vm1, %v78_v7, 0.0  ;;  %146 = vst [vmem:[#allocation7 + $0x8] sm:$0xff] %v78_v7  ;;  %154 = vst [vmem:[#allocation7 + $0x10] sm:$0xff] %v133_v10 }
  0x2d   :  { %164 = vst [vmem:[#allocation7 + $0x28] sm:$0xff] %v190_v11  ;;  %155 = vst [vmem:[#allocation7 + $0x18] sm:$0xff] %v134_v12  ;;  %p249_p6 = pnand %p248_p5, %p242_p2 }
  0x2f   :  { %252 = shalt.err (!%p249_p6)
}
  0x30   :  { %s253_s10 = scalar_lea.hbm %s337_s2, 768 }
  0x31   :  { %p254_p7 = scmp.ne.s32.totalorder %s337_s2, %s253_s10  ;;  %p257_p8 = scmp.lt.u32.totalorder %s253_s10, %s337_s2 }
  0x33   :  { %p259_p9 = pnand %p257_p8, %p254_p7 }
  0x35   :  { %262 = shalt.err (!%p259_p9)
}
  0x36   :  { %176 = dma.vmem_to_hbm [thread:$0]  %s171_s7, 768, %s337_s2, [#allocation4], %s270_s19, %s270_s19, %s271_s20  }
  0x37   :  { %267 = dma.done.wait [#allocation4], 768  }
  0x38   :  { %268 = vsyncadd [#allocation4], 4294966528 }
  0x39   :  { %180 = vsyncpa [#allocation3], 1 }
  0x3a   :  { %181 = vsyncpa [#allocation6], 1 }
  0x3b   :  { %182 = vsyncpa [#allocation4], 1 }

</bundles_post_ra>
